<compile_context>
chip_gen: v7x
topology: tpu7x:2x2x1
jax: 0.10.0
libtpu: 0.0.40
codegen_flags: <defaults>
</compile_context>

<pallas_src>
import jax
import jax.numpy as jnp
from jax.experimental import pallas as pl
from jax.experimental.pallas import tpu as pltpu


def _round_up(x, m):
    return ((x + m - 1) // m) * m


def _cdiv(a, b):
    return (a + b - 1) // b


def _make_kernel(n_mel_true, n_gate_true, blocks_per_core):
    inv_mel = 1.0 / float(n_mel_true)
    inv_gate = 1.0 / float(n_gate_true)

    def kernel(mo_ref, mp_ref, mt_ref, go_ref, gt_ref, out_ref, acc_ref, gate_ref):
        c = pl.program_id(0)   # "parallel" core-split axis (2 TCs on v7x)
        i = pl.program_id(1)   # "arbitrary" reduction axis over row tiles

        # ---- per-core init.
        @pl.when(i == 0)
        def _init():
            acc_ref[...] = jnp.zeros_like(acc_ref)
            gate_ref[...] = jnp.zeros_like(gate_ref)

        # ---- one-shot gate BCE (constant index_map -> the gate block is DMA'd once;
        #      the EUP work runs only on core 0's first grid step).
        @pl.when(jnp.logical_and(i == 0, c == 0))
        def _gate():
            x = go_ref[...].astype(jnp.float32)
            z = gt_ref[...].astype(jnp.float32)
            # numerically-stable BCE-with-logits: max(x,0) - x*z + log1p(exp(-|x|))
            bce = jnp.maximum(x, 0.0) - x * z + jnp.log1p(jnp.exp(-jnp.abs(x)))
            gate_ref[...] = jnp.reshape(jnp.sum(bce) * inv_gate, (1, 1))

        # ---- steady state: vld + sub/mul/add only; element-wise accumulation into the
        #      (8, T) vector accumulator (no per-tile cross-lane reduction).
        mo = mo_ref[...].astype(jnp.float32)
        mp = mp_ref[...].astype(jnp.float32)
        mt = mt_ref[...].astype(jnp.float32)
        d1 = mo - mt
        d2 = mp - mt
        sq = d1 * d1 + d2 * d2
        tm, tn = sq.shape
        # (tm, tn) -> (tm//8, 8, tn) splits exactly along the sublane tiling (layout no-op);
        # the axis-0 sum is pure VPU vreg adds.
        acc_ref[...] += sq.reshape(tm // 8, 8, tn).sum(axis=0)

        # ---- finalize: single cross-lane reduction + scaling, add the gate term,
        #      broadcast into this core's lane-dense (1, 128) output slab.
        @pl.when(i == blocks_per_core - 1)
        def _fin():
            partial = jnp.sum(acc_ref[...]) * inv_mel + gate_ref[0, 0]
            out_ref[...] = jnp.full((1, 128), partial, dtype=jnp.float32)

    return kernel


def tacotron2_loss(model_output, targets):
    """model_output = (mel_out, mel_out_postnet, gate_out, _); targets = (mel_target, gate_target)."""
    mel_out, mel_out_postnet, gate_out, _ = model_output
    mel_target, gate_target = targets

    B, n_mel, T = mel_out.shape
    R = B * n_mel
    n_mel_true = R * T

    # mel tensors: lane-dense (B*n_mel, T) slab (contiguous reshape, free).
    mo = mel_out.reshape(R, T)
    mp = mel_out_postnet.reshape(R, T)
    mt = mel_target.reshape(R, T)

    # gate tensors: lane-dense 2-D layout (never (N, 1), which wastes ~128x lanes/VMEM).
    if gate_out.ndim >= 2 and gate_out.shape[-1] >= 8:
        go = gate_out.reshape(-1, gate_out.shape[-1])
        gt = gate_target.reshape(go.shape)
    else:
        go = gate_out.reshape(1, -1)
        gt = gate_target.reshape(1, -1)
    n_gate_true = go.size

    # Row tile size: largest sublane-aligned tile keeping the three double-buffered mel
    # blocks under ~20 MiB of VMEM (fits comfortably on v7x/v6e/v5e).
    itemsize = jnp.dtype(mel_out.dtype).itemsize
    sub = {4: 8, 2: 16, 1: 32}.get(itemsize, 8)
    budget = 20 * 1024 * 1024
    tm = max(sub, (budget // (3 * 2 * T * itemsize)) // sub * sub)
    tm = min(512, tm)
    r8 = _round_up(R, sub)
    if r8 <= tm:
        tm = r8

    # Split row tiles across TensorCores when there is more than one tile of work.
    total_blocks = _cdiv(R, tm)
    n_cores = 2 if total_blocks >= 2 else 1
    blocks_per_core = _cdiv(total_blocks, n_cores)
    r_pad = n_cores * blocks_per_core * tm
    if r_pad != R:
        # zero-padded rows give diff == 0, so the squared-error sums stay unbiased;
        # the divisor uses the true element count.
        pad = ((0, r_pad - R), (0, 0))
        mo = jnp.pad(mo, pad)
        mp = jnp.pad(mp, pad)
        mt = jnp.pad(mt, pad)

    mel_spec = pl.BlockSpec((tm, T), lambda c, i: (c * blocks_per_core + i, 0))
    gate_spec = pl.BlockSpec(go.shape, lambda c, i: (0, 0))   # constant -> DMA'd once

    bytes_accessed = int(3 * r_pad * T * itemsize
                         + 2 * n_gate_true * jnp.dtype(gate_out.dtype).itemsize
                         + n_cores * 128 * 4)
    cost = pl.CostEstimate(
        flops=int(6 * n_mel_true + 5 * n_gate_true),
        transcendentals=int(2 * n_gate_true),
        bytes_accessed=bytes_accessed,
    )

    out = pl.pallas_call(
        _make_kernel(n_mel_true, n_gate_true, blocks_per_core),
        out_shape=jax.ShapeDtypeStruct((1, n_cores * 128), jnp.float32),
        grid_spec=pltpu.PrefetchScalarGridSpec(
            num_scalar_prefetch=0,
            grid=(n_cores, blocks_per_core),
            in_specs=[mel_spec, mel_spec, mel_spec, gate_spec, gate_spec],
            out_specs=pl.BlockSpec((1, 128), lambda c, i: (0, c)),
            scratch_shapes=[
                pltpu.VMEM((8, T), jnp.float32),   # running mel sum (vector accumulator)
                pltpu.VMEM((1, 1), jnp.float32),   # gate loss (computed once on core 0)
            ],
        ),
        compiler_params=pltpu.CompilerParams(
            dimension_semantics=("parallel", "arbitrary"),
            vmem_limit_bytes=32 * 1024 * 1024,
        ),
        cost_estimate=cost,
    )(mo, mp, mt, go, gt)

    # Each core's partial loss lives in lane 0 of its 128-lane output slab.
    return jnp.sum(out.reshape(n_cores, 128)[:, 0])


def _reference_loss(model_output, targets):
    mel_out, mel_post, gate_out, _ = model_output
    mel_tgt, gate_tgt = targets
    mel_loss = jnp.mean((mel_out - mel_tgt) ** 2) + jnp.mean((mel_post - mel_tgt) ** 2)
    x = gate_out.reshape(-1).astype(jnp.float32)
    z = gate_tgt.reshape(-1).astype(jnp.float32)
    bce = jnp.maximum(x, 0.0) - x * z + jnp.log1p(jnp.exp(-jnp.abs(x)))
    return mel_loss + jnp.mean(bce)


if __name__ == "__main__":
    # Small synthetic shapes consistent with Tacotron2: batch=2, n_mel=8, frames=16.
    B, N_MEL, T = 2, 8, 16
    key = jax.random.PRNGKey(0)
    k1, k2, k3, k4, k5 = jax.random.split(key, 5)

    mel_out = jax.random.normal(k1, (B, N_MEL, T), dtype=jnp.float32)
    mel_out_postnet = jax.random.normal(k2, (B, N_MEL, T), dtype=jnp.float32)
    mel_target = jax.random.normal(k3, (B, N_MEL, T), dtype=jnp.float32)
    gate_out = jax.random.normal(k4, (B, T), dtype=jnp.float32)               # logits
    gate_target = jax.random.bernoulli(k5, 0.5, (B, T)).astype(jnp.float32)   # 0/1 targets

    model_output = (mel_out, mel_out_postnet, gate_out, None)
    targets = (mel_target, gate_target)

    loss = tacotron2_loss(model_output, targets)
    loss = jax.block_until_ready(loss)

    ref = _reference_loss(model_output, targets)
    assert jnp.allclose(loss, ref, rtol=1e-5, atol=1e-5), (loss, ref)

    print("KERNEL_OK")
</pallas_src>

<mosaic_0001>
module attributes {stable_mosaic.version = 11 : i64} {
  func.func @kernel(%arg0: i32, %arg1: i32, %arg2: memref<16x16xf32, #tpu.memory_space<vmem>>, %arg3: memref<16x16xf32, #tpu.memory_space<vmem>>, %arg4: memref<16x16xf32, #tpu.memory_space<vmem>>, %arg5: memref<2x16xf32, #tpu.memory_space<vmem>>, %arg6: memref<2x16xf32, #tpu.memory_space<vmem>>, %arg7: memref<1x128xf32, #tpu.memory_space<vmem>>, %arg8: memref<8x16xf32, #tpu.memory_space<vmem>>, %arg9: memref<1x1xf32, #tpu.memory_space<vmem>>) attributes {dimension_semantics = [#tpu.dimension_semantics<parallel>, #tpu.dimension_semantics<arbitrary>], iteration_bounds = array<i64: 1, 1>, scalar_prefetch = 0 : i64, scratch_operands = 2 : i64, tpu.core_type = #tpu.core_type<tc>, window_params = [{transform_indices = @transform_0, window_bounds = array<i64: 16, 16>}, {transform_indices = @transform_1, window_bounds = array<i64: 16, 16>}, {transform_indices = @transform_2, window_bounds = array<i64: 16, 16>}, {pipeline_mode = #tpu.pipeline_mode<synchronous>, transform_indices = @transform_3, window_bounds = array<i64: 2, 16>}, {pipeline_mode = #tpu.pipeline_mode<synchronous>, transform_indices = @transform_4, window_bounds = array<i64: 2, 16>}, {transform_indices = @transform_5, window_bounds = array<i64: 1, 128>}]} {
    %c0_i32 = arith.constant 0 : i32
    %0 = arith.cmpi eq, %arg1, %c0_i32 : i32
    %1 = arith.extui %0 : i1 to i32
    %c0_i32_0 = arith.constant 0 : i32
    %2 = arith.cmpi ne, %1, %c0_i32_0 : i32
    scf.if %2 {
      %cst_15 = arith.constant 0.000000e+00 : f32
      %24 = vector.broadcast %cst_15 : f32 to vector<8x16xf32>
      %c0_16 = arith.constant 0 : index
      %c0_17 = arith.constant 0 : index
      %25 = vector.load %arg8[%c0_16, %c0_17] : memref<8x16xf32, #tpu.memory_space<vmem>>, vector<8x16xf32>
      tpu.vector_store %arg8[%c0_16, %c0_17], %24 {strides = array<i32>} : memref<8x16xf32, #tpu.memory_space<vmem>>, vector<8x16xf32>,
      %cst_18 = arith.constant 0.000000e+00 : f32
      %26 = vector.broadcast %cst_18 : f32 to vector<1x1xf32>
      %c0_19 = arith.constant 0 : index
      %c0_20 = arith.constant 0 : index
      %27 = vector.load %arg9[%c0_19, %c0_20] : memref<1x1xf32, #tpu.memory_space<vmem>>, vector<1x1xf32>
      tpu.vector_store %arg9[%c0_19, %c0_20], %26 {strides = array<i32>} : memref<1x1xf32, #tpu.memory_space<vmem>>, vector<1x1xf32>,
    } else {
    }
    %c0_i32_1 = arith.constant 0 : i32
    %3 = arith.cmpi eq, %arg1, %c0_i32_1 : i32
    %c0_i32_2 = arith.constant 0 : i32
    %4 = arith.cmpi eq, %arg0, %c0_i32_2 : i32
    %5 = arith.andi %3, %4 : i1
    %6 = arith.extui %5 : i1 to i32
    %c0_i32_3 = arith.constant 0 : i32
    %7 = arith.cmpi ne, %6, %c0_i32_3 : i32
    scf.if %7 {
      %c0_15 = arith.constant 0 : index
      %c0_16 = arith.constant 0 : index
      %24 = vector.load %arg5[%c0_15, %c0_16] : memref<2x16xf32, #tpu.memory_space<vmem>>, vector<2x16xf32>
      %c0_17 = arith.constant 0 : index
      %c0_18 = arith.constant 0 : index
      %25 = vector.load %arg6[%c0_17, %c0_18] : memref<2x16xf32, #tpu.memory_space<vmem>>, vector<2x16xf32>
      %cst_19 = arith.constant 0.000000e+00 : f32
      %26 = vector.broadcast %cst_19 : f32 to vector<2x16xf32>
      %27 = arith.maximumf %24, %26 : vector<2x16xf32>
      %28 = arith.mulf %24, %25 : vector<2x16xf32>
      %29 = arith.subf %27, %28 : vector<2x16xf32>
      %30 = math.absf %24 : vector<2x16xf32>
      %cst_20 = arith.constant 0.000000e+00 : f32
      %31 = vector.broadcast %cst_20 : f32 to vector<2x16xf32>
      %32 = arith.subf %31, %30 : vector<2x16xf32>
      %33 = math.exp %32 : vector<2x16xf32>
      %34 = math.log1p %33 : vector<2x16xf32>
      %35 = arith.addf %29, %34 : vector<2x16xf32>
      %36 = vector.shape_cast %35 : vector<2x16xf32> to vector<1x2x16xf32>
      %cst_21 = arith.constant dense<0.000000e+00> : vector<1xf32>
      %37 = vector.multi_reduction <add>, %36, %cst_21 [1, 2] : vector<1x2x16xf32> to vector<1xf32>
      %38 = vector.shape_cast %37 : vector<1xf32> to vector<1x1x1xf32>
      %39 = vector.extract %38[0, 0, 0] : f32 from vector<1x1x1xf32>
      %cst_22 = arith.constant 3.125000e-02 : f32
      %40 = arith.mulf %39, %cst_22 : f32
      %41 = vector.broadcast %40 : f32 to vector<1x1xf32>
      %c0_23 = arith.constant 0 : index
      %c0_24 = arith.constant 0 : index
      %42 = vector.load %arg9[%c0_23, %c0_24] : memref<1x1xf32, #tpu.memory_space<vmem>>, vector<1x1xf32>
      tpu.vector_store %arg9[%c0_23, %c0_24], %41 {strides = array<i32>} : memref<1x1xf32, #tpu.memory_space<vmem>>, vector<1x1xf32>,
    } else {
    }
    %c0 = arith.constant 0 : index
    %c0_4 = arith.constant 0 : index
    %8 = vector.load %arg2[%c0, %c0_4] : memref<16x16xf32, #tpu.memory_space<vmem>>, vector<16x16xf32>
    %c0_5 = arith.constant 0 : index
    %c0_6 = arith.constant 0 : index
    %9 = vector.load %arg3[%c0_5, %c0_6] : memref<16x16xf32, #tpu.memory_space<vmem>>, vector<16x16xf32>
    %c0_7 = arith.constant 0 : index
    %c0_8 = arith.constant 0 : index
    %10 = vector.load %arg4[%c0_7, %c0_8] : memref<16x16xf32, #tpu.memory_space<vmem>>, vector<16x16xf32>
    %11 = arith.subf %8, %10 : vector<16x16xf32>
    %12 = arith.subf %9, %10 : vector<16x16xf32>
    %13 = arith.mulf %11, %11 : vector<16x16xf32>
    %14 = arith.mulf %12, %12 : vector<16x16xf32>
    %15 = arith.addf %13, %14 : vector<16x16xf32>
    %c0_9 = arith.constant 0 : index
    %c0_10 = arith.constant 0 : index
    %16 = vector.load %arg8[%c0_9, %c0_10] : memref<8x16xf32, #tpu.memory_space<vmem>>, vector<8x16xf32>
    %17 = vector.shape_cast %15 : vector<16x16xf32> to vector<2x8x16xf32>
    %cst = arith.constant dense<0.000000e+00> : vector<8x16xf32>
    %18 = vector.multi_reduction <add>, %17, %cst [0] : vector<2x8x16xf32> to vector<8x16xf32>
    %19 = arith.addf %16, %18 : vector<8x16xf32>
    %c0_11 = arith.constant 0 : index
    %c0_12 = arith.constant 0 : index
    %20 = vector.load %arg8[%c0_11, %c0_12] : memref<8x16xf32, #tpu.memory_space<vmem>>, vector<8x16xf32>
    tpu.vector_store %arg8[%c0_11, %c0_12], %19 {strides = array<i32>} : memref<8x16xf32, #tpu.memory_space<vmem>>, vector<8x16xf32>,
    %c0_i32_13 = arith.constant 0 : i32
    %21 = arith.cmpi eq, %arg1, %c0_i32_13 : i32
    %22 = arith.extui %21 : i1 to i32
    %c0_i32_14 = arith.constant 0 : i32
    %23 = arith.cmpi ne, %22, %c0_i32_14 : i32
    scf.if %23 {
      %c0_15 = arith.constant 0 : index
      %c0_16 = arith.constant 0 : index
      %24 = vector.load %arg8[%c0_15, %c0_16] : memref<8x16xf32, #tpu.memory_space<vmem>>, vector<8x16xf32>
      %25 = vector.shape_cast %24 : vector<8x16xf32> to vector<1x8x16xf32>
      %cst_17 = arith.constant dense<0.000000e+00> : vector<1xf32>
      %26 = vector.multi_reduction <add>, %25, %cst_17 [1, 2] : vector<1x8x16xf32> to vector<1xf32>
      %27 = vector.shape_cast %26 : vector<1xf32> to vector<1x1x1xf32>
      %28 = vector.extract %27[0, 0, 0] : f32 from vector<1x1x1xf32>
      %cst_18 = arith.constant 3.906250e-03 : f32
      %29 = arith.mulf %28, %cst_18 : f32
      %c0_19 = arith.constant 0 : index
      %c0_20 = arith.constant 0 : index
      %30 = vector.load %arg9[%c0_19, %c0_20] : memref<1x1xf32, #tpu.memory_space<vmem>>, vector<1x1xf32>
      %31 = vector.extract %30[0, 0] : f32 from vector<1x1xf32>
      %32 = arith.addf %29, %31 : f32
      %33 = vector.broadcast %32 : f32 to vector<1x128xf32>
      %c0_21 = arith.constant 0 : index
      %c0_22 = arith.constant 0 : index
      %34 = vector.load %arg7[%c0_21, %c0_22] : memref<1x128xf32, #tpu.memory_space<vmem>>, vector<1x128xf32>
      tpu.vector_store %arg7[%c0_21, %c0_22], %33 {strides = array<i32>} : memref<1x128xf32, #tpu.memory_space<vmem>>, vector<1x128xf32>,
    } else {
    }
    return
  }
  func.func @transform_0(%arg0: i32, %arg1: i32) -> (i32, i32) {
    %c1_i32 = arith.constant 1 : i32
    %0 = arith.muli %arg0, %c1_i32 : i32
    %1 = arith.addi %0, %arg1 : i32
    %c0_i32 = arith.constant 0 : i32
    %c0_i32_0 = arith.constant 0 : i32
    return %1, %c0_i32 : i32, i32
  }
  func.func @transform_1(%arg0: i32, %arg1: i32) -> (i32, i32) {
    %c1_i32 = arith.constant 1 : i32
    %0 = arith.muli %arg0, %c1_i32 : i32
    %1 = arith.addi %0, %arg1 : i32
    %c0_i32 = arith.constant 0 : i32
    %c0_i32_0 = arith.constant 0 : i32
    return %1, %c0_i32 : i32, i32
  }
  func.func @transform_2(%arg0: i32, %arg1: i32) -> (i32, i32) {
    %c1_i32 = arith.constant 1 : i32
    %0 = arith.muli %arg0, %c1_i32 : i32
    %1 = arith.addi %0, %arg1 : i32
    %c0_i32 = arith.constant 0 : i32
    %c0_i32_0 = arith.constant 0 : i32
    return %1, %c0_i32 : i32, i32
  }
  func.func @transform_3(%arg0: i32, %arg1: i32) -> (i32, i32) {
    %c0_i32 = arith.constant 0 : i32
    %c0_i32_0 = arith.constant 0 : i32
    %c0_i32_1 = arith.constant 0 : i32
    return %c0_i32, %c0_i32_0 : i32, i32
  }
  func.func @transform_4(%arg0: i32, %arg1: i32) -> (i32, i32) {
    %c0_i32 = arith.constant 0 : i32
    %c0_i32_0 = arith.constant 0 : i32
    %c0_i32_1 = arith.constant 0 : i32
    return %c0_i32, %c0_i32_0 : i32, i32
  }
  func.func @transform_5(%arg0: i32, %arg1: i32) -> (i32, i32) {
    %c0_i32 = arith.constant 0 : i32
    %c0_i32_0 = arith.constant 0 : i32
    return %c0_i32, %arg0 : i32, i32
  }
}

</mosaic_0001>

<bundles_post_ra>
// kernel: tpu_custom_call.1
= control target key start
LH: loop header
LB: loop body
LE: loop exit
PB: predicated region body
PF: predicated region fallthrough
CT: control target
= control target key end

     0   :  { %10 = vsyncpa [#allocation5], 0  ;;  %s411_s0 = inlined_call_operand.hbm [shape: f32[16,16], index: 0, kind: input, shape index: {}]   ;;  %s412_s1 = inlined_call_operand.hbm [shape: f32[16,16], index: 1, kind: input, shape index: {}]   ;;  %s413_s2 = inlined_call_operand.hbm [shape: f32[16,16], index: 2, kind: input, shape index: {}]   ;;  %s414_s3 = inlined_call_operand.vmem [shape: f32[2,16], index: 3, kind: input, shape index: {}]   ;;  %s415_s4 = inlined_call_operand.vmem [shape: f32[2,16], index: 4, kind: input, shape index: {}]   ;;  %s416_s5 = inlined_call_operand.hbm [shape: f32[1,128], index: 5, kind: output, shape index: {}]  }
   0x1   :  { %11 = vsyncpa [#allocation8], 0 }
   0x2   :  { %12 = vsyncpa [#allocation6], 0  ;;  %s297_s18 = smov [#allocation7]   ;;  %s298_s20 = smov [#allocation4]  }
   0x3   :  { %s38_s19 = sshll.u32 %s297_s18, 4  ;;  %s22_s21 = sshll.u32 %s298_s20, 4  ;;  %s39_s19 = int_to_ptr.vmem [resolvable:$true] %s38_s19  ;;  %s334_s21 = int_to_ptr.vmem [resolvable:$true] %s22_s21 }
   0x4   :  { %s203_s24 = scalar_lea.hbm %s412_s1, 256 }
   0x5   :  { %p204_p0 = scmp.ne.s32.totalorder %s412_s1, %s203_s24  ;;  %p207_p1 = scmp.lt.u32.totalorder %s203_s24, %s412_s1 }
   0x7   :  { %p209_p2 = pnand %p207_p1, %p204_p0 }
   0x9   :  { %212 = shalt.err (!%p209_p2)
}
   0xa   :  { %s213_s29 = scalar_lea.vmem %s39_s19, 256  ;;  %p218_p4 = scmp.lt.s32.totalorder %s39_s19, %s39_s19 }
   0xb   :  { %p214_p3 = scmp.ne.s32.totalorder %s39_s19, %s213_s29  ;;  %p219_p5 = scmp.lt.s32.totalorder %s213_s29, %s213_s29 }
   0xd   :  { %p220_p6 = por %p219_p5, %p218_p4 }
   0xf   :  { %p221_p7 = pnand %p220_p6, %p214_p3 }
  0x11   :  { %224 = shalt.err (!%p221_p7)
}
  0x12   :  { %s299_s30 = smov 128   ;;  %s300_s6 = smov 8  }
  0x13   :  { %44 = dma.hbm_to_vmem [thread:$0]  %s412_s1, 256, %s39_s19, [#allocation8], %s299_s30, %s299_s30, %s300_s6  }
  0x14   :  { %s225_s11 = scalar_lea.hbm %s411_s0, 256 }
  0x15   :  { %p226_p8 = scmp.ne.s32.totalorder %s411_s0, %s225_s11  ;;  %p229_p9 = scmp.lt.u32.totalorder %s225_s11, %s411_s0 }
  0x17   :  { %p231_p10 = pnand %p229_p9, %p226_p8 }
  0x19   :  { %234 = shalt.err (!%p231_p10)
}
  0x1a   :  { %s235_s16 = scalar_lea.vmem %s334_s21, 256  ;;  %p240_p12 = scmp.lt.s32.totalorder %s334_s21, %s334_s21 }
  0x1b   :  { %p236_p11 = scmp.ne.s32.totalorder %s334_s21, %s235_s16  ;;  %p241_p13 = scmp.lt.s32.totalorder %s235_s16, %s235_s16 }
  0x1d   :  { %p242_p0 = por %p241_p13, %p240_p12 }
  0x1f   :  { %p243_p1 = pnand %p242_p0, %p236_p11 }
  0x21   :  { %246 = shalt.err (!%p243_p1)
}
  0x22   :  { %28 = dma.hbm_to_vmem [thread:$0]  %s411_s0, 256, %s334_s21, [#allocation5], %s299_s30, %s299_s30, %s300_s6  }
  0x23   :  { %s301_s18 = smov [#allocation9]   ;;  %s247_s23 = scalar_lea.hbm %s413_s2, 256 }
  0x24   :  { %s54_s19 = sshll.u32 %s301_s18, 4  ;;  %p248_p2 = scmp.ne.s32.totalorder %s413_s2, %s247_s23  ;;  %s55_s19 = int_to_ptr.vmem [resolvable:$true] %s54_s19 }
  0x25   :  { %p251_p3 = scmp.lt.u32.totalorder %s247_s23, %s413_s2 }
  0x27   :  { %p253_p4 = pnand %p251_p3, %p248_p2 }
  0x29   :  { %256 = shalt.err (!%p253_p4)
}
  0x2a   :  { %s257_s28 = scalar_lea.vmem %s55_s19, 256  ;;  %p262_p6 = scmp.lt.s32.totalorder %s55_s19, %s55_s19 }
  0x2b   :  { %p258_p5 = scmp.ne.s32.totalorder %s55_s19, %s257_s28  ;;  %p263_p7 = scmp.lt.s32.totalorder %s257_s28, %s257_s28 }
  0x2d   :  { %p264_p8 = por %p263_p7, %p262_p6 }
  0x2f   :  { %p265_p9 = pnand %p264_p8, %p258_p5 }
  0x31   :  { %268 = shalt.err (!%p265_p9)
}
  0x32   :  { %60 = dma.hbm_to_vmem [thread:$0]  %s413_s2, 256, %s55_s19, [#allocation8], %s299_s30, %s299_s30, %s300_s6  }
  0x33   :  { %291 = dma.done.wait [#allocation5], 256  }
  0x34   :  { %292 = vsyncadd [#allocation5], 4294967040 }
  0x35   :  { %293 = dma.done.wait [#allocation8], 512  }
  0x36   :  { %294 = vsyncadd [#allocation8], 4294966784  ;;  %vm84_vm0 = vcmask 130048   ;;  %v302_v0 = vmov 0.0   ;;  %v93_v1 = vld [vmem:[%s414_s3] sm:$0x3] }
  0x37   :  { %85 = vst.msk [vmem:[#allocation2] sm:$0xff] %vm84_vm0, %v302_v0  ;;  %v127_v2 = vld [vmem:[#allocation4] sm:$0xff]  ;;  %v98_v3 = vand.u32 2147483647, %v93_v1  ;;  %v128_v4 = vld [vmem:[#allocation4 + $0x8] sm:$0xff]  ;;  %v129_v5 = vld [vmem:[#allocation7] sm:$0xff] }
  0x38   :  { %v130_v6 = vld [vmem:[#allocation7 + $0x8] sm:$0xff]  ;;  %v131_v7 = vld [vmem:[#allocation9] sm:$0xff]  ;;  %v132_v8 = vld [vmem:[#allocation9 + $0x8] sm:$0xff]  ;;  %v95_v31 = vmax.f32 %v93_v1, 0.0  ;;  %vm112_vm2 = vcmask 123904   ;;  %vm86_vm3 = vcmask 0  }
  0x39   :  { %v99_v9 = vsub.f32 0.0, %v98_v3  ;;  %v133_v10 = vsub.f32 %v127_v2, %v131_v7  ;;  %v134_v11 = vsub.f32 %v128_v4, %v132_v8  ;;  %v135_v12 = vsub.f32 %v129_v5, %v131_v7  ;;  %v94_v29 = vld [vmem:[%s415_s4] sm:$0x3]  ;;  %87 = vst.msk [vmem:[#allocation3] sm:$0x1] %vm86_vm3, %v302_v0  ;;  %s303_s9 = smov [#allocation10]  }
  0x3a   :  { %v136_v13 = vsub.f32 %v130_v6, %v132_v8  ;;  %v96_v32 = vmul.f32 %v94_v29, %v93_v1  ;;  %s176_s10 = sshll.u32 %s303_s9, 4  ;;  %s177_s10 = int_to_ptr.vmem [resolvable:$true] %s176_s10 }
  0x3b   :  { %v100_v14 = vmul.f32 1.442695, %v99_v9  ;;  %v137_v15 = vmul.f32 %v133_v10, %v133_v10  ;;  %v138_v16 = vmul.f32 %v134_v11, %v134_v11  ;;  %v139_v17 = vmul.f32 %v135_v12, %v135_v12  ;;  %s269_s13 = scalar_lea.vmem %s177_s10, 16  ;;  %s273_s14 = scalar_lea.vmem %s177_s10, 32 }
  0x3c   :  { %v140_v18 = vmul.f32 %v136_v13, %v136_v13  ;;  %v97_v36 = vsub.f32 %v95_v31, %v96_v32  ;;  %p270_p10 = scmp.ne.s32.totalorder %s177_s10, %s269_s13  ;;  %p274_p11 = scmp.lt.s32.totalorder %s177_s10, %s177_s10 }
  0x3d   :  { %199 = vpow2.f32 %v100_v14  ;;  %v141_v19 = vadd.f32 %v139_v17, %v137_v15  ;;  %p275_p12 = scmp.lt.s32.totalorder %s273_s14, %s269_s13 }
  0x3e   :  { %v142_v20 = vadd.f32 %v140_v18, %v138_v16  ;;  %v143_v21 = vld [vmem:[#allocation2] sm:$0xff] }
  0x3f   :  { %v145_v22 = vsel %vm84_vm0, %v141_v19, 0.0  ;;  %p276_p13 = por %p275_p12, %p274_p11 }
  0x40   :  { %v146_v23 = vsel %vm84_vm0, %v142_v20, 0.0 }
  0x41   :  { %v147_v24 = vadd.f32 %v146_v23, %v145_v22  ;;  %p277_p0 = pnand %p276_p13, %p270_p10 }
  0x43   :  { %v148_v25 = vadd.f32 %v147_v24, %v143_v21 }
  0x45   :  { %149 = vst.msk [vmem:[#allocation2] sm:$0xff] %vm84_vm0, %v148_v25 }
  0x47   :  { %v200_v26 = vpop.eup %199 }
  0x48   :  { %v102_v27 = vadd.f32 1.0, %v200_v26  ;;  %v105_v28 = vmul.f32 -0.5, %v200_v26  ;;  %v108_v33 = vand.u32 2147483647, %v200_v26 }
  0x4a   :  { %201 = vlog2.f32 %v102_v27  ;;  %v106_v30 = vadd.f32 1.0, %v105_v28  ;;  %vm109_vm1 = vcmp.lt.f32.partialorder %v108_v33, 0.0004427343 }
  0x4c   :  { %v107_v34 = vmul.f32 %v200_v26, %v106_v30  ;;  %v153_v40 = vld [vmem:[#allocation2] sm:$0xff] }
  0x4d   :  { %v154_v42 = vsel %vm84_vm0, %v153_v40, 0.0 }
  0x54   :  { %v202_v35 = vpop.eup %201 }
  0x55   :  { %v104_v37 = vmul.f32 0.6931472, %v202_v35 }
  0x57   :  { %v110_v38 = vsel %vm109_vm1, %v107_v34, %v104_v37 }
  0x58   :  { %v111_v39 = vadd.f32 %v110_v38, %v97_v36 }
  0x5a   :  { %v113_v41 = vsel %vm112_vm2, %v111_v39, 0.0 }
  0x5b   :  { %114 = vadd.xlane.f32.xlu0 %v113_v41 }
  0x5f   :  { %155 = vadd.xlane.f32.xlu0 %v154_v42 }
  0xe8   :  { %v115_v43 = vpop.xlane.xlu0 %114 }
  0xe9   :  { %v116_v44 = vrot.slane %v115_v43, 4 }
  0xeb   :  { %v117_v45 = vadd.f32 %v116_v44, %v115_v43 }
  0xec   :  { %v156_v46 = vpop.xlane.xlu0 %155 }
  0xed   :  { %v118_v47 = vrot.slane %v117_v45, 2  ;;  %v157_v48 = vrot.slane %v156_v46, 4 }
  0xef   :  { %v119_v49 = vadd.f32 %v118_v47, %v117_v45  ;;  %v158_v50 = vadd.f32 %v157_v48, %v156_v46 }
  0xf1   :  { %v120_v51 = vrot.slane %v119_v49, 1  ;;  %v159_v52 = vrot.slane %v158_v50, 2 }
  0xf3   :  { %v121_v53 = vadd.f32 %v120_v51, %v119_v49  ;;  %v160_v54 = vadd.f32 %v159_v52, %v158_v50 }
  0xf5   :  { %186 = vpush %v121_v53  ;;  %v161_v55 = vrot.slane %v160_v54, 1 }
  0xf7   :  { %v162_v56 = vadd.f32 %v161_v55, %v160_v54 }
  0xf9   :  { %188 = vpush %v162_v56 }
 0x126   :  { %s187_s4 = spop %186 }
 0x127   :  { %s123_s30 = smul.f32 0.03125, %s187_s4 }
 0x129   :  { %v124_v57 = vstv %s123_s30 }
 0x12a   :  { %126 = vst.msk [vmem:[#allocation3] sm:$0x1] %vm86_vm3, %v124_v57  ;;  %s189_s6 = spop %188 }
 0x12b   :  { %s164_s8 = smul.f32 0.00390625, %s189_s6 }
 0x131   :  { %v165_v58 = vld [vmem:[#allocation3] sm:$0x1] }
 0x132   :  { %190 = vpush %v165_v58 }
 0x163   :  { %s191_s11 = spop %190 }
 0x164   :  { %s167_s12 = sadd.f32 %s191_s11, %s164_s8 }
 0x166   :  { %v168_v59 = vstv %s167_s12 }
 0x167   :  { %169 = vst [vmem:[#allocation10] sm:$0x1] %v168_v59 }
 0x168   :  { %280 = shalt.err (!%p277_p0)
}
 0x169   :  { %s281_s1 = scalar_lea.hbm %s416_s5, 16 }
 0x16a   :  { %p282_p1 = scmp.ne.s32.totalorder %s416_s5, %s281_s1  ;;  %p285_p2 = scmp.lt.u32.totalorder %s281_s1, %s416_s5 }
 0x16c   :  { %p287_p3 = pnand %p285_p2, %p282_p1 }
 0x16e   :  { %290 = shalt.err (!%p287_p3)
}
 0x16f   :  { %179 = dma.vmem_to_hbm [thread:$0]  %s177_s10, 16, %s416_s5, [#allocation6]  }
 0x170   :  { %295 = dma.done.wait [#allocation6], 16  }
 0x171   :  { %296 = vsyncadd [#allocation6], 4294967280 }
 0x172   :  { %183 = vsyncpa [#allocation5], 1 }
 0x173   :  { %184 = vsyncpa [#allocation8], 1 }
 0x174   :  { %185 = vsyncpa [#allocation6], 1 }

</bundles_post_ra>
